<compile_context>
chip_gen: v7x
topology: tpu7x:2x2x1
jax: 0.10.0
libtpu: 0.0.40
codegen_flags: <defaults>
</compile_context>

<pallas_src>
import math

import jax
import jax.numpy as jnp
from jax import lax
from jax.experimental import pallas as pl
from jax.experimental.pallas import tpu as pltpu


def _round_up(x, m):
    return (x + m - 1) // m * m


def _choose_spatial_tile(howo, kkcp, cout, itemsize, vmem_budget=12 * 2**20):
    """Largest multiple of 128 dividing Ho*Wo whose double-buffered blocks fit
    the VMEM budget; falls back to the full axis if Ho*Wo % 128 != 0."""
    if howo % 128 != 0:
        return howo                      # correct (masked stores), small cases only
    per_lane = 2 * (kkcp + cout) * itemsize      # 2x input block + 2x output block
    max_lanes = max(128, (vmem_budget // per_lane) // 128 * 128)
    best, t = 128, 128
    while t <= min(howo, max_lanes):
        if howo % t == 0:
            best = t
        t += 128
    return best


# -----------------------------------------------------------------------------
# Pallas kernel: one fused matmul per (batch, spatial-tile) grid step.
# All branches + the mean + the bias are a single (Cout,KKCp)x(KKCp,Nt) MXU op.
# -----------------------------------------------------------------------------
def _fused_conv_mean_kernel(p_ref, w_ref, o_ref):
    # p_ref: (1, KKCp, Nt)  fused im2col patches (input dtype, lane-dense)
    # w_ref: (Cout, KKCp)   fused weights, pre-scaled by 1/num_kernels (+bias col)
    # o_ref: (1, Cout, Nt)  NCHW-flat output tile (lane-dense full-tile store)
    res = lax.dot_general(
        w_ref[...], p_ref[0],
        dimension_numbers=(((1,), (0,)), ((), ())),
        preferred_element_type=jnp.float32,
    )
    o_ref[0] = res.astype(o_ref.dtype)


# -----------------------------------------------------------------------------
# Wrapper-side im2col (pure XLA): (B, Cin, H, W) -> (B, K*K*Cin, Ho*Wo)
# Row order = (dy, dx, ci) with ci fastest (matches weight flattening below).
# -----------------------------------------------------------------------------
def _branch_patches(x_nchw, K, stride, padding, Ho, Wo):
    B, Cin, H, W = x_nchw.shape
    s, p = stride, padding
    xpad = jnp.pad(x_nchw, ((0, 0), (0, 0), (p, p), (p, p)))
    taps = []
    for dy in range(K):
        for dx in range(K):
            blk = xpad[:, :,
                       dy:dy + s * (Ho - 1) + 1:s,
                       dx:dx + s * (Wo - 1) + 1:s]          # (B, Cin, Ho, Wo)
            taps.append(blk.reshape(B, Cin, Ho * Wo))
    return jnp.concatenate(taps, axis=1)


# -----------------------------------------------------------------------------
# Module: parameter init + fused forward
# -----------------------------------------------------------------------------
def init_params(key, in_channels, out_channels, num_kernels=3):
    """kaiming_normal(fan_out, relu)-style init, zero bias (as in the module)."""
    params = []
    for i in range(1, num_kernels + 1):
        K = 2 * i - 1
        key, sub = jax.random.split(key)
        std = math.sqrt(2.0 / (out_channels * K * K))
        w = std * jax.random.normal(sub, (out_channels, in_channels, K, K),
                                    jnp.float32)
        b = jnp.zeros((out_channels,), jnp.float32)
        params.append(dict(weight=w, bias=b, kernel_size=K,
                           stride=i, padding=(2 * i - 1) // 2))
    return params


def conv_resizeback_forward(params, conv_masked_output):
    """conv_masked_output: list of NCHW tensors, one per branch.
    Returns mean over branches of Conv2d_i(conv_masked_output[i])."""
    num_kernels = len(params)
    B, Cin = conv_masked_output[0].shape[:2]
    Cout = params[0]["weight"].shape[0]
    dtype = conv_masked_output[0].dtype

    def _out_hw(x, prm):
        _, _, H, W = x.shape
        K, s, p = prm["kernel_size"], prm["stride"], prm["padding"]
        return (H + 2 * p - K) // s + 1, (W + 2 * p - K) // s + 1

    Ho, Wo = _out_hw(conv_masked_output[0], params[0])
    for prm, x in zip(params, conv_masked_output):
        assert _out_hw(x, prm) == (Ho, Wo), "branch output sizes must match"
    HoWo = Ho * Wo

    # ---- build the fused, lane-dense im2col slab + fused weight matrix ------
    scale = 1.0 / float(num_kernels)
    patch_list, wt_list = [], []
    bias_sum = jnp.zeros((Cout,), jnp.float32)
    for prm, x in zip(params, conv_masked_output):
        K, s, p = prm["kernel_size"], prm["stride"], prm["padding"]
        patch_list.append(_branch_patches(x, K, s, p, Ho, Wo))
        wt_list.append(jnp.transpose(prm["weight"], (0, 2, 3, 1))
                       .reshape(Cout, K * K * Cin))
        bias_sum = bias_sum + prm["bias"].astype(jnp.float32)

    ones_row = jnp.ones((B, 1, HoWo), dtype)                   # bias fold
    patches = jnp.concatenate(patch_list + [ones_row], axis=1)  # (B, KKC+1, HoWo)
    wfused = jnp.concatenate(
        [scale * jnp.concatenate(wt_list, axis=1),
         (scale * bias_sum).reshape(Cout, 1)], axis=1)           # (Cout, KKC+1)

    KKC1 = patches.shape[1]
    KKCp = _round_up(KKC1, 8)        # keep the contraction axis sublane-aligned
    if KKCp != KKC1:
        patches = jnp.pad(patches, ((0, 0), (0, KKCp - KKC1), (0, 0)))
        wfused = jnp.pad(wfused, ((0, 0), (0, KKCp - KKC1)))
    patches = patches.astype(dtype)   # keep MXU operands in the input dtype
    wfused = wfused.astype(dtype)

    itemsize = jnp.dtype(dtype).itemsize
    Ntile = _choose_spatial_tile(HoWo, KKCp, Cout, itemsize)
    grid = (B, HoWo // Ntile)

    out = pl.pallas_call(
        _fused_conv_mean_kernel,
        out_shape=jax.ShapeDtypeStruct((B, Cout, HoWo), dtype),
        grid=grid,
        in_specs=[
            pl.BlockSpec((1, KKCp, Ntile), lambda b, n: (b, 0, n)),
            pl.BlockSpec((Cout, KKCp), lambda b, n: (0, 0)),
        ],
        out_specs=pl.BlockSpec((1, Cout, Ntile), lambda b, n: (b, 0, n)),
        compiler_params=pltpu.CompilerParams(
            dimension_semantics=("parallel", "parallel")),
    )(patches, wfused)

    # output is already NCHW-flat and channel-major: reshape only, no transpose
    return out.reshape(B, Cout, Ho, Wo)


# -----------------------------------------------------------------------------
# XLA reference (correctness cross-check only)
# -----------------------------------------------------------------------------
def _ref_branch(x, w, b, stride, padding):
    y = lax.conv_general_dilated(
        x, w, (stride, stride), [(padding, padding), (padding, padding)],
        dimension_numbers=("NCHW", "OIHW", "NCHW"),
        precision=lax.Precision.HIGHEST)
    return y + b.reshape(1, -1, 1, 1)


# -----------------------------------------------------------------------------
if __name__ == "__main__":
    B, C = 2, 4
    out_hw = 16          # common output spatial size
    num_kernels = 3

    key = jax.random.PRNGKey(0)
    key, *xkeys = jax.random.split(key, num_kernels + 1)
    # Branch i (kernel 2i-1, stride i) maps spatial i*out_hw -> out_hw, matching
    # the module's "resize back the i-times up-scaled input" usage.
    xs = [jax.random.normal(k, (B, C, i * out_hw, i * out_hw), jnp.float32)
          for i, k in zip(range(1, num_kernels + 1), xkeys)]

    params = init_params(key, C, C, num_kernels)

    out = conv_resizeback_forward(params, xs)
    out = jax.block_until_ready(out)

    refs = [_ref_branch(x, prm["weight"], prm["bias"], prm["stride"], prm["padding"])
            for prm, x in zip(params, xs)]
    ref = sum(refs) / float(len(refs))
    assert out.shape == ref.shape == (B, C, out_hw, out_hw), (out.shape, ref.shape)
    max_err = float(jnp.max(jnp.abs(out - ref)))
    assert bool(jnp.allclose(out, ref, atol=2e-3, rtol=2e-3)), f"max err {max_err}"

    print("KERNEL_OK")
</pallas_src>

<mosaic_0001>
module attributes {stable_mosaic.version = 11 : i64} {
  func.func @_fused_conv_mean_kernel(%arg0: i32, %arg1: i32, %arg2: memref<1x144x256xf32, #tpu.memory_space<vmem>>, %arg3: memref<4x144xf32, #tpu.memory_space<vmem>>, %arg4: memref<1x4x256xf32, #tpu.memory_space<vmem>>) attributes {dimension_semantics = [#tpu.dimension_semantics<parallel>, #tpu.dimension_semantics<parallel>], iteration_bounds = array<i64: 2, 1>, scalar_prefetch = 0 : i64, scratch_operands = 0 : i64, tpu.core_type = #tpu.core_type<tc>, window_params = [{transform_indices = @transform_0, window_bounds = array<i64: 1, 144, 256>}, {pipeline_mode = #tpu.pipeline_mode<synchronous>, transform_indices = @transform_1, window_bounds = array<i64: 4, 144>}, {transform_indices = @transform_2, window_bounds = array<i64: 1, 4, 256>}]} {
    %c0 = arith.constant 0 : index
    %c0_0 = arith.constant 0 : index
    %0 = vector.load %arg3[%c0, %c0_0] : memref<4x144xf32, #tpu.memory_space<vmem>>, vector<4x144xf32>
    %c0_1 = arith.constant 0 : index
    %c0_2 = arith.constant 0 : index
    %c0_3 = arith.constant 0 : index
    %1 = vector.load %arg2[%c0_1, %c0_2, %c0_3] : memref<1x144x256xf32, #tpu.memory_space<vmem>>, vector<1x144x256xf32>
    %2 = vector.shape_cast %1 : vector<1x144x256xf32> to vector<144x256xf32>
    %cst = arith.constant dense<0.000000e+00> : vector<4x256xf32>
    %3 = tpu.matmul %0, %2, %cst {dimension_numbers = #tpu.dot_dimension_numbers<[1], [0], [0], [1], [0, 0, 1, 1], [], []>} : vector<4x144xf32>, vector<144x256xf32>, vector<4x256xf32> -> vector<4x256xf32>
    %c0_4 = arith.constant 0 : index
    %c0_5 = arith.constant 0 : index
    %c0_6 = arith.constant 0 : index
    %4 = vector.load %arg4[%c0_4, %c0_5, %c0_6] : memref<1x4x256xf32, #tpu.memory_space<vmem>>, vector<1x4x256xf32>
    %5 = vector.shape_cast %4 : vector<1x4x256xf32> to vector<4x256xf32>
    %6 = vector.shape_cast %3 : vector<4x256xf32> to vector<1x4x256xf32>
    tpu.vector_store %arg4[%c0_4, %c0_5, %c0_6], %6 {strides = array<i32>} : memref<1x4x256xf32, #tpu.memory_space<vmem>>, vector<1x4x256xf32>,
    return
  }
  func.func @transform_0(%arg0: i32, %arg1: i32) -> (i32, i32, i32) {
    %c0_i32 = arith.constant 0 : i32
    %c0_i32_0 = arith.constant 0 : i32
    return %arg0, %c0_i32, %arg1 : i32, i32, i32
  }
  func.func @transform_1(%arg0: i32, %arg1: i32) -> (i32, i32) {
    %c0_i32 = arith.constant 0 : i32
    %c0_i32_0 = arith.constant 0 : i32
    %c0_i32_1 = arith.constant 0 : i32
    return %c0_i32, %c0_i32_0 : i32, i32
  }
  func.func @transform_2(%arg0: i32, %arg1: i32) -> (i32, i32, i32) {
    %c0_i32 = arith.constant 0 : i32
    %c0_i32_0 = arith.constant 0 : i32
    return %arg0, %c0_i32, %arg1 : i32, i32, i32
  }
}

</mosaic_0001>

<bundles_post_ra>
// kernel: tpu_custom_call.1
= control target key start
LH: loop header
LB: loop body
LE: loop exit
PB: predicated region body
PF: predicated region fallthrough
CT: control target
= control target key end

     0   :  { %7 = vsyncpa [#allocation3], 0  ;;  %s979_s0 = inlined_call_operand.hbm [shape: f32[2,144,256], index: 0, kind: input, shape index: {}]   ;;  %s980_s1 = inlined_call_operand.hbm [shape: f32[4,144], index: 1, kind: input, shape index: {}]   ;;  %s981_s2 = inlined_call_operand.hbm [shape: f32[2,4,256], index: 2, kind: output, shape index: {}]  }
   0x1   :  { %9 = vsyncpa [#allocation3 + $0x1], 0 }
   0x2   :  { %10 = vsyncpa [#allocation6], 0 }
   0x3   :  { %11 = vsyncpa [#allocation4], 0 }
   0x4   :  { %13 = vsyncpa [#allocation4 + $0x1], 0  ;;  %s721_s9 = smov 0   ;;  %s723_s10 = smov 0  }
   0x5   :  { %s725_s11 = smov 0   ;;  %s727_s12 = smov 0  }
   0x6   :  { %s729_s13 = smov 0   ;;  %s731_s14 = smov 0  }
   0x7 LB: > { %s424_s15 = sadd.s32 4294967295, %s699_s14   ;;  %s425_s16 = sadd.s32 4294967294, %s699_s14   ;;  %s699_s14 = sphi %s731_s14, %s19_s14   ;;  %s695_s13 = sphi %s729_s13, %s1009_s13   ;;  %s691_s12 = sphi %s727_s12, %s1008_s12   ;;  %s687_s11 = sphi %s725_s11, %s1007_s11   ;;  %s683_s10 = sphi %s723_s10, %s1006_s10   ;;  %s679_s9 = sphi %s721_s9, %s1005_s9  }
   0x8   : > { %s40_s17 = sadd.s32 1, %s687_s11  ;;  %p47_p0 = scmp.ne.s32.totalorder %s687_s11, %s683_s10 }
   0x9   : > { %p48_p1 = scmp.eq.s32.totalorder %s699_s14, 0  ;;  %p53_p2 = scmp.ne.s32.totalorder %s683_s10, %s679_s9 }
   0xa   : > { %p759_p3 = scmp.eq.s32.totalorder %s424_s15, 0  ;;  %p100_p4 = scmp.eq.s32.totalorder %s424_s15, 1 }
   0xb   : > { %p763_p5 = por %p48_p1, %p47_p0  ;;  %p106_p6 = scmp.eq.s32.totalorder %s425_s16, 1 }
   0xc   : > { %s988_s18 = scalar_select %p759_p3, 1, 0 }
   0xd   : > { %p769_p7 = por %p759_p3, %p53_p2  ;;  %p773_p8 = por %p100_p4, %p47_p0 }
   0xe   : > { %p777_p9 = por %p106_p6, %p53_p2  ;;  %p426_p10 = scmp.ge.s32.totalorder %s699_s14, 1 }
   0xf   : > { %s990_s20 = scalar_select %p769_p7, 1, 0 }
  0x10   : > { %s991_s21 = scalar_select %p773_p8, 1, 0 }
  0x11   : > { %s992_s22 = scalar_select %p777_p9, 1, 0 }
  0x12   : > { %p113_p11 = scmp.lt.s32.totalorder %s699_s14, 3  ;;  %s701_s24 = smov [#allocation5]  }
  0x13   : > { %s126_s25 = sshll.u32 %s701_s24, 4  ;;  %p500_p1 = scmp.lt.s32.totalorder %s699_s14, 2  ;;  %s127_s25 = int_to_ptr.vmem [resolvable:$true] %s126_s25 }
  0x14   : > { %p784_p13 = pnand %p426_p10, %p113_p11  ;;  %s31_s28 = sadd.s32 1, %s695_s13 }
  0x15   : > { %p793_p4 = pnand %p500_p1, %p763_p5  ;;  %p804_p6 = scmp.ge.s32.totalorder %s31_s28, 2 }
  0x16   : > { %s993_s23 = scalar_select %p784_p13, 1, 0 }
  0x17   : > { %p487_p0 = pneg %p784_p13  ;;  %s137_s30 = sand.u32 1, %s687_s11  }
  0x18   : > { %s994_s26 = scalar_select %p793_p4, 1, 0 }
  0x19   : > { %p799_p2 = pnand %p487_p0, %p759_p3  ;;  %s555_s5 = scalar_lea.hbm %s980_s1, 128 }
  0x1a   : > { %s996_s29 = scalar_select %p804_p6, 1, 0 }
  0x1b   : > { %p556_p5 = scmp.ne.s32.totalorder %s980_s1, %s555_s5  ;;  %p557_p10 = pneg %p799_p2 }
  0x1c   : > { %p562_p0 = scmp.lt.u32.totalorder %s555_s5, %s980_s1 }
  0x1d   : > { %p558_p11 = pnand %p557_p10, %p556_p5 }
  0x1f   : > { %p559_p1 = pneg %p558_p11 }
  0x21   : > { %p564_p12 = pnand %p562_p0, %p559_p1 }
  0x23   : > { %567 = shalt.err (!%p564_p12)
}
  0x24   : > { %s568_s16 = scalar_lea.vmem %s127_s25, 128  ;;  %p576_p7 = scmp.lt.s32.totalorder %s127_s25, %s127_s25 }
  0x25   : > { %p569_p9 = scmp.ne.s32.totalorder %s127_s25, %s568_s16  ;;  %p577_p13 = scmp.lt.s32.totalorder %s568_s16, %s568_s16 }
  0x27   : > { %p571_p8 = pnand %p569_p9, %p557_p10  ;;  %p578_p4 = por %p577_p13, %p576_p7 }
  0x29   : > { %p572_p3 = pneg %p571_p8 }
  0x2b   : > { %p579_p6 = pnand %p578_p4, %p572_p3 }
  0x2d   : > { %582 = shalt.err (!%p579_p6)
}
  0x2e   : > { %490 = dma.hbm_to_vmem [thread:$0]  (!%p799_p2), %s980_s1, 128, %s127_s25, [#allocation6]  }
  0x2f   : > { %p997_p9 = scmp.ne.s32.totalorder %s996_s29, 0  ;;  %s476_s3 = smul.u32 288, %s137_s30 }
  0x30   : > { %s477_s5 = smul.u32 4608, %s695_s13  ;;  %s844_s29 = scalar_lea.sflag [#allocation3], %s137_s30 }
  0x31   : > { %s1011_s28 = smov (%p997_p9, %s31_s28), 0  ;;  %s141_s8 = scalar_lea.vmem [#allocation2], %s476_s3 }
  0x32   : > { %s35_s4 = ssub.s32 %s695_s13, %s1011_s28  ;;  %s835_s7 = scalar_lea.hbm %s979_s0, %s477_s5 }
  0x33   : > { %p38_p3 = scmp.eq.s32.totalorder %s35_s4, 0  ;;  %s150_s15 = sshll.u32 %s141_s8, 4  ;;  %s842_s15 = int_to_ptr.vmem [resolvable:$true] %s150_s15 }
  0x34   : > { %s583_s16 = scalar_lea.hbm %s835_s7, 4608  ;;  %p998_p8 = scmp.ne.s32.totalorder %s994_s26, 0 }
  0x35   : > { %s840_s25 = scalar_select %p38_p3, %s687_s11, %s40_s17  }
  0x36   : > { %p584_p7 = scmp.ne.s32.totalorder %s835_s7, %s583_s16  ;;  %p585_p12 = pneg %p998_p8 }
  0x37   : > { %s588_s3 = scalar_lea.hbm %s979_s0, 9216  ;;  %p589_p2 = scmp.lt.u32.totalorder %s835_s7, %s979_s0 }
  0x38   : > { %p586_p13 = pnand %p585_p12, %p584_p7  ;;  %p590_p6 = scmp.lt.u32.totalorder %s588_s3, %s583_s16 }
  0x39   : > { %p592_p10 = scmp.lt.u32.totalorder %s583_s16, %s835_s7 }
  0x3a   : > { %p587_p4 = pneg %p586_p13  ;;  %p591_p5 = por %p590_p6, %p589_p2 }
  0x3c   : > { %p593_p11 = por %p592_p10, %p591_p5 }
  0x3e   : > { %p594_p1 = pnand %p593_p11, %p587_p4 }
  0x40   : > { %597 = shalt.err (!%p594_p1)
}
  0x41   : > { %s598_s17 = scalar_lea.vmem %s842_s15, 4608  ;;  %s702_s30 = smov [#allocation2]  }
  0x42   : > { %p599_p0 = scmp.ne.s32.totalorder %s842_s15, %s598_s17  ;;  %s603_s27 = sshll.u32 %s702_s30, 4  ;;  %s604_s27 = int_to_ptr.vmem [resolvable:$false] %s603_s27 }
  0x43   : > { %s605_s6 = scalar_lea.vmem %s604_s27, 9216  ;;  %p606_p7 = scmp.lt.s32.totalorder %s842_s15, %s604_s27 }
  0x44   : > { %p601_p9 = pnand %p599_p0, %p585_p12  ;;  %p607_p13 = scmp.lt.s32.totalorder %s605_s6, %s598_s17 }
  0x46   : > { %p602_p3 = pneg %p601_p9  ;;  %p608_p2 = por %p607_p13, %p606_p7 }
  0x48   : > { %p609_p6 = pnand %p608_p2, %p602_p3 }
  0x4a   : > { %612 = shalt.err (!%p609_p6)
}
  0x4b   : > { %s703_s8 = smov 256   ;;  %s704_s16 = smov 16  }
  0x4c   : > { %494 = dma.hbm_to_vmem [thread:$0]  (!%p998_p8), %s835_s7, 4608, %s842_s15, %s844_s29, %s703_s8, %s703_s8, %s704_s16  }
  0x4d   : > { %p999_p12 = scmp.ne.s32.totalorder %s993_s23, 0 }
  0x4e   : > { %s875_s19 = sand.u32 (!%p999_p12), 1, %s683_s10   ;;  %p1000_p4 = scmp.ne.s32.totalorder (!%p999_p12), %s990_s20, 0 }
  0x4f   : > { %162 = sbr.rel (%p999_p12) target bundleno = 358 (0x166), region = 28  ;;  %s165_s3 = scalar_lea.sflag (!%p999_p12), [#allocation3], %s875_s19 }
  0x50   : > { %s478_s24 = smul.u32 (!%p999_p12), 288, %s875_s19 }
  0x52   : > { %s879_s4 = scalar_lea.vmem (!%p999_p12), [#allocation2], %s478_s24 }
  0x56   : > { %666 = dma.done.wait (%p1000_p4), %s165_s3, 4608  }
  0x57   : > { %668 = vsyncadd (%p1000_p4), %s165_s3, 4294962688  ;;  %p1001_p8 = scmp.ne.s32.totalorder %s988_s18, 0 }
  0x59   : > { %670 = dma.done.wait (%p1001_p8), [#allocation6], 128  }
  0x5a   : > { %672 = vsyncadd (%p1001_p8), [#allocation6], 4294967168  ;;  %v197_v0 = vld [vmem:[%s879_s4 + $0x8] sm:$0xff]  ;;  %v199_v1 = vld [vmem:[%s879_s4 + $0x18] sm:$0xff]  ;;  %vm234_vm0 = vcmask 130048   ;;  %s432_s18 = sshll.u32 %s875_s19, 3 }
  0x5b   : > { %v196_v2 = vld [vmem:[%s879_s4] sm:$0xff]  ;;  %v440_v3 = vpack.c.bf16 %v199_v1, %v197_v0  ;;  %v198_v4 = vld [vmem:[%s879_s4 + $0x10] sm:$0xff]  ;;  %v201_v5 = vld [vmem:[%s879_s4 + $0x28] sm:$0xff]  ;;  %s439_s20 = sshll.u32 %s691_s12, 7  ;;  %s192_s23 = scalar_lea.vmem [#allocation7], %s432_s18 }
  0x5c   : > { %v203_v6 = vld [vmem:[%s879_s4 + $0x38] sm:$0xff]  ;;  %v442_v7 = vpack.c.bf16 %v198_v4, %v196_v2  ;;  %v200_v9 = vld [vmem:[%s879_s4 + $0x20] sm:$0xff]  ;;  %v202_v10 = vld [vmem:[%s879_s4 + $0x30] sm:$0xff]  ;;  %s330_s26 = sshll.u32 %s192_s23, 4  ;;  %s930_s29 = scalar_lea.hbm %s981_s2, %s439_s20  ;;  %s932_s26 = int_to_ptr.vmem [resolvable:$true] %s330_s26 }
  0x5d   : > { %v444_v8 = vpack.c.bf16 %v203_v6, %v201_v5  ;;  %v205_v11 = vld [vmem:[%s879_s4 + $0x48] sm:$0xff]  ;;  %441 = vmatprep.subr.bf16.mxu0 %v440_v3  ;;  %v207_v12 = vld [vmem:[%s879_s4 + $0x58] sm:$0xff]  ;;  %v446_v13 = vpack.c.bf16 %v202_v10, %v200_v9  ;;  %v204_v15 = vld [vmem:[%s879_s4 + $0x40] sm:$0xff]  ;;  %s314_s5 = scalar_lea.sflag [#allocation4], %s875_s19  ;;  %s613_s17 = scalar_lea.vmem %s932_s26, 128 }
  0x5e   : > { %443 = vmatpush1.bf16.msra.mxu0 %v442_v7  ;;  %v448_v14 = vpack.c.bf16 %v207_v12, %v205_v11  ;;  %v206_v16 = vld [vmem:[%s879_s4 + $0x50] sm:$0xff]  ;;  %v209_v17 = vld [vmem:[%s879_s4 + $0x68] sm:$0xff]  ;;  %v211_v18 = vld [vmem:[%s879_s4 + $0x78] sm:$0xff]  ;;  %p614_p5 = scmp.ne.s32.totalorder %s932_s26, %s613_s17  ;;  %p1002_p10 = scmp.ne.s32.totalorder %s991_s21, 0 }
  0x5f   : > { %445 = vmatprep.subr.bf16.mxu0 %v444_v8  ;;  %v450_v19 = vpack.c.bf16 %v206_v16, %v204_v15  ;;  %v452_v20 = vpack.c.bf16 %v211_v18, %v209_v17  ;;  %v208_v21 = vld [vmem:[%s879_s4 + $0x60] sm:$0xff]  ;;  %v210_v22 = vld [vmem:[%s879_s4 + $0x70] sm:$0xff]  ;;  %v213_v23 = vld [vmem:[%s879_s4 + $0x88] sm:$0xff]  ;;  %s705_s12 = smov [#allocation7]  }
  0x60   : > { %v215_v24 = vld [vmem:[%s879_s4 + $0x98] sm:$0xff]  ;;  %v454_v25 = vpack.c.bf16 %v210_v22, %v208_v21  ;;  %v195_v26 = vld [vmem:[#allocation5] sm:$0xff]  ;;  %v214_v29 = vld [vmem:[%s879_s4 + $0x90] sm:$0xff]  ;;  %p615_p11 = pnand %p614_p5, %p1002_p10  ;;  %s617_s30 = sshll.u32 %s705_s12, 4  ;;  %s618_s30 = int_to_ptr.vmem [resolvable:$false] %s617_s30 }
  0x61   : > { %v456_v27 = vpack.c.bf16 %v215_v24, %v213_v23  ;;  %v212_v28 = vld [vmem:[%s879_s4 + $0x80] sm:$0xff]  ;;  %v233_v30 = vcombine.high %v195_v26, %v195_v26  ;;  %v217_v31 = vld [vmem:[%s879_s4 + $0xa8] sm:$0xff]  ;;  %v219_v32 = vld [vmem:[%s879_s4 + $0xb8] sm:$0xff]  ;;  %s619_s27 = scalar_lea.vmem %s618_s30, 256  ;;  %p620_p0 = scmp.lt.s32.totalorder %s932_s26, %s618_s30 }
  0x62   : > { %447 = vmatpush1.bf16.msra.mxu0 %v446_v13  ;;  %v458_v33 = vpack.c.bf16 %v214_v29, %v212_v28  ;;  %v460_v34 = vpack.c.bf16 %v219_v32, %v217_v31  ;;  %v216_v35 = vld [vmem:[%s879_s4 + $0xa0] sm:$0xff]  ;;  %v218_v36 = vld [vmem:[%s879_s4 + $0xb0] sm:$0xff]  ;;  %v221_v37 = vld [vmem:[%s879_s4 + $0xc8] sm:$0xff]  ;;  %p616_p1 = pneg %p615_p11  ;;  %p621_p9 = scmp.lt.s32.totalorder %s619_s27, %s613_s17 }
  0x63   : > { %449 = vmatprep.subr.bf16.mxu0 %v448_v14  ;;  %433 = vmatprep.mubr.msk.f32.mxu0 %vm234_vm0, %v233_v30  ;;  %v223_v38 = vld [vmem:[%s879_s4 + $0xd8] sm:$0xff]  ;;  %v462_v39 = vpack.c.bf16 %v218_v36, %v216_v35  ;;  %v220_v41 = vld [vmem:[%s879_s4 + $0xc0] sm:$0xff]  ;;  %v222_v42 = vld [vmem:[%s879_s4 + $0xd0] sm:$0xff] }
  0x64   : > { %v464_v40 = vpack.c.bf16 %v223_v38, %v221_v37  ;;  %v225_v43 = vld [vmem:[%s879_s4 + $0xe8] sm:$0xff]  ;;  %v227_v44 = vld [vmem:[%s879_s4 + $0xf8] sm:$0xff]  ;;  %v466_v45 = vpack.c.bf16 %v222_v42, %v220_v41  ;;  %v224_v47 = vld [vmem:[%s879_s4 + $0xe0] sm:$0xff]  ;;  %p622_p3 = por %p621_p9, %p620_p0 }
  0x65   : > { %v468_v46 = vpack.c.bf16 %v227_v44, %v225_v43  ;;  %v226_v48 = vld [vmem:[%s879_s4 + $0xf0] sm:$0xff]  ;;  %v229_v49 = vld [vmem:[%s879_s4 + $0x108] sm:$0xff]  ;;  %v231_v50 = vld [vmem:[%s879_s4 + $0x118] sm:$0xff] }
  0x66   : > { %451 = vmatpush1.bf16.msra.mxu0 %v450_v19  ;;  %v470_v51 = vpack.c.bf16 %v226_v48, %v224_v47  ;;  %v472_v52 = vpack.c.bf16 %v231_v50, %v229_v49  ;;  %v228_v53 = vld [vmem:[%s879_s4 + $0x100] sm:$0xff]  ;;  %v230_v54 = vld [vmem:[%s879_s4 + $0x110] sm:$0xff]  ;;  %p623_p7 = pnand %p622_p3, %p616_p1 }
  0x67   : > { %453 = vmatprep.subr.bf16.mxu0 %v452_v20  ;;  %v474_v55 = vpack.c.bf16 %v230_v54, %v228_v53 }
  0x6a   : > { %455 = vmatpush1.bf16.msra.mxu0 %v454_v25 }
  0x6b   : > { %457 = vmatprep.subr.bf16.mxu0 %v456_v27 }
  0x6e   : > { %459 = vmatpush1.bf16.msra.mxu0 %v458_v33 }
  0x6f   : > { %461 = vmatprep.subr.bf16.mxu0 %v460_v34 }
  0x72   : > { %463 = vmatpush1.bf16.msra.mxu0 %v462_v39 }
  0x73   : > { %465 = vmatprep.subr.bf16.mxu0 %v464_v40 }
  0x76   : > { %467 = vmatpush1.bf16.msra.mxu0 %v466_v45 }
  0x77   : > { %469 = vmatprep.subr.bf16.mxu0 %v468_v46 }
  0x7a   : > { %471 = vmatpush1.bf16.msra.mxu0 %v470_v51 }
  0x7b   : > { %473 = vmatprep.subr.bf16.mxu0 %v472_v52 }
  0x7e   : > { %475 = vmatpush1.bf16.msra.mxu0 %v474_v55 }
  0x81   : > { %302 = vmatmul.mubr.f32.vlgmr.msra.gmra.mrb[0].mxu0 %v195_v26 }
 0x154   : > { %v303_v56 = vpop.f32.mrb[0].mxu0 }
 0x155   : > { %v305_v57 = vpop.f32.mrb[1].mxu0 }
 0x156   : > { %v310_v58 = vcombine.low %v303_v56, %v305_v57 }
 0x158   : > { %312 = vst [vmem:[%s192_s23] sm:$0xff] %v310_v58 }
 0x159   : > { %626 = shalt.err (!%p623_p7)
}
 0x15a   : > { %s627_s6 = scalar_lea.hbm %s930_s29, 128  ;;  %s631_s19 = scalar_lea.hbm %s981_s2, 256 }
 0x15b   : > { %p628_p13 = scmp.ne.s32.totalorder %s930_s29, %s627_s6  ;;  %p632_p12 = scmp.lt.u32.totalorder %s930_s29, %s981_s2 }
 0x15c   : > { %p633_p4 = scmp.lt.u32.totalorder %s631_s19, %s627_s6  ;;  %p635_p5 = scmp.lt.u32.totalorder %s627_s6, %s930_s29 }
 0x15d   : > { %p629_p2 = pnand %p628_p13, %p1002_p10 }
 0x15e   : > { %p634_p8 = por %p633_p4, %p632_p12 }
 0x15f   : > { %p630_p6 = pneg %p629_p2 }
 0x160   : > { %p636_p11 = por %p635_p5, %p634_p8 }
 0x162   : > { %p637_p1 = pnand %p636_p11, %p630_p6 }
 0x164   : > { %640 = shalt.err (!%p637_p1)
}
 0x165   : > { %485 = dma.vmem_to_hbm [thread:$0]  (%p1002_p10), %s932_s26, 128, %s930_s29, %s314_s5  }
 0x166 PF: > { %s342_s4 = sand.u32 1, %s679_s9   ;;  %p1003_p0 = scmp.ne.s32.totalorder %s992_s22, 0 }
 0x167   : > { %p1004_p9 = scmp.ge.s32.totalorder %s699_s14, 2  ;;  %s343_s18 = scalar_lea.sflag [#allocation4], %s342_s4 }
 0x169   : > { %p496_p3 = pnand %p1004_p9, %p1003_p0 }
 0x16b   : > { %674 = dma.done.wait (!%p496_p3), %s343_s18, 128  }
 0x16c   : > { %676 = vsyncadd (!%p496_p3), %s343_s18, 4294967168  ;;  %s19_s14 = sadd.s32 1, %s699_s14   ;;  %s1005_s9 = smov %s683_s10 }
 0x16d   : > { %p16_p7 = scmp.ge.s32.totalorder %s19_s14, 4   ;;  %s1006_s10 = smov %s687_s11 }
 0x16e   : > { %s1007_s11 = smov %s840_s25  ;;  %s1008_s12 = smov %s695_s13 }
 0x16f   : > { %s1009_s13 = smov %s1011_s28  ;;  %18 = sbr.rel (!%p16_p7) target bundleno = 7 (0x7), region = 77 }
 0x176   :  { %348 = vsyncpa [#allocation3], 1 }
 0x177   :  { %350 = vsyncpa [#allocation3 + $0x1], 1 }
 0x178   :  { %351 = vsyncpa [#allocation6], 1 }
 0x179   :  { %352 = vsyncpa [#allocation4], 1 }
 0x17a   :  { %354 = vsyncpa [#allocation4 + $0x1], 1 }

</bundles_post_ra>
